<compile_context>
chip_gen: v5e
topology: v5e:2x2
jax: 0.10.0
libtpu: 0.0.40
codegen_flags: <defaults>
</compile_context>

<pallas_src>
import functools
import math

import jax
import jax.numpy as jnp
from jax.experimental import pallas as pl
from jax.experimental.pallas import tpu as pltpu


def _round_up(n: int, m: int) -> int:
    return ((n + m - 1) // m) * m


def _vmem_limit_bytes() -> int:
    """Generation-aware VMEM limit: v5e/v6e have 128 MiB physical, v7x 64 MiB."""
    cap = 64 * 1024 * 1024
    try:
        cap = int(getattr(pltpu.get_tpu_info(), "vmem_capacity_bytes", cap))
    except Exception:
        pass  # interpret mode / no TPU visible: keep conservative default
    return max(32 * 1024 * 1024, int(cap * 0.85))


def _pick_row_tile(rows: int, d_model: int, d_ff: int,
                   in_itemsize: int, vmem_limit: int) -> int:
    """Largest row tile whose working set (resident bf16 weights + biases +
    double-buffered in/out rows + f32/bf16 intermediates) fits the VMEM limit."""
    sub = max(8, 32 // in_itemsize)                     # f32: 8, bf16: 16, int8: 32
    # Resident, single-buffered weights: w1 + w2 in bf16, biases in f32.
    resident = 2 * d_model * d_ff * 2 + 4 * (d_ff + d_model)
    # Per-row working set.
    per_row = (2 * d_model * in_itemsize                # input rows (double-buffered)
               + 2 * d_model * 4                        # f32 output rows (double-buffered)
               + d_model * (4 + 2)                      # y f32 + yn bf16
               + d_ff * (4 + 2))                        # hidden f32 + bf16
    avail = vmem_limit - resident - (4 << 20)           # headroom for compiler scratch
    tile = max(sub, min(max(avail, per_row) // per_row, 2048))
    tile = (tile // sub) * sub
    tile = min(tile, _round_up(rows, sub))
    # TODO(synk): on v7x additionally cap so the grid keeps >= 2 steps (2 TCs).
    return max(sub, tile)


def _layernorm_f32(x, alpha, bias, eps):
    """Reference LayerNormalization on an f32 2-D tile (unbiased std, eps on std).
    NOTE: degenerate only for d_model == 1 (divide by zero in d-1)."""
    d = x.shape[-1]
    mean = jnp.mean(x, axis=-1, keepdims=True)
    diff = x - mean
    var = jnp.sum(diff * diff, axis=-1, keepdims=True) * (1.0 / (d - 1))
    inv = pl.reciprocal(jnp.sqrt(var) + eps, approx=True)   # EUP slot
    return (alpha * inv) * diff + bias                       # folded into alpha


# ---------------------------------------------------------------------------
# Sub-layer 1: y1 = x + W_o(MHA(norm1(x)))       (one batch element per grid step)
# ---------------------------------------------------------------------------
def _attn_sublayer_kernel(alpha_ref, bias_ref, x_ref,
                          wq_ref, wk_ref, wv_ref, wo_ref, o_ref,
                          *, n_heads: int, eps: float):
    x = x_ref[...].astype(jnp.float32)                  # (S, D) f32
    s_len, d = x.shape
    d_k = d // n_heads
    xn = _layernorm_f32(x, alpha_ref[0, 0], bias_ref[0, 0], eps).astype(jnp.bfloat16)

    # Full-width (S,D)@(D,D) projections, bf16 in / f32 accumulate.
    q = jnp.dot(xn, wq_ref[...], preferred_element_type=jnp.float32)
    k = jnp.dot(xn, wk_ref[...], preferred_element_type=jnp.float32)
    v = jnp.dot(xn, wv_ref[...], preferred_element_type=jnp.float32)
    q = q * (1.0 / math.sqrt(d_k))                       # fold 1/sqrt(d_k) into q

    # Split heads ONCE: (S, D) -> (H, S, d_k); head becomes the batch dim.
    qh = jnp.swapaxes(q.reshape(s_len, n_heads, d_k), 0, 1).astype(jnp.bfloat16)
    kh = jnp.swapaxes(k.reshape(s_len, n_heads, d_k), 0, 1).astype(jnp.bfloat16)
    vh = jnp.swapaxes(v.reshape(s_len, n_heads, d_k), 0, 1).astype(jnp.bfloat16)

    # NOTE: src_mask has no effect in the reference (masked_fill not in-place).
    s = jnp.einsum('hqd,hkd->hqk', qh, kh,
                   preferred_element_type=jnp.float32)    # (H, S, S)
    s = s - jnp.max(s, axis=-1, keepdims=True)
    p = jnp.exp(s)
    p = p * pl.reciprocal(jnp.sum(p, axis=-1, keepdims=True), approx=True)

    oh = jnp.einsum('hqk,hkd->hqd', p.astype(jnp.bfloat16), vh,
                    preferred_element_type=jnp.float32)   # (H, S, d_k)

    # Merge heads back to the lane-dense concat and do ONE output projection.
    concat = jnp.swapaxes(oh, 0, 1).reshape(s_len, d)     # (S, D)
    attn = jnp.dot(concat.astype(jnp.bfloat16), wo_ref[...],
                   preferred_element_type=jnp.float32)
    o_ref[...] = x + attn                                 # residual; dropout == identity


def attention_sublayer(x, ln_alpha, ln_bias, wq, wk, wv, wo, *, n_heads, eps=1e-6):
    b, s, d = x.shape
    alpha_s = jnp.asarray(ln_alpha, jnp.float32).reshape(1, 1)
    bias_s = jnp.asarray(ln_bias, jnp.float32).reshape(1, 1)
    w16 = [jnp.asarray(w, jnp.bfloat16) for w in (wq, wk, wv, wo)]

    # Weights never change across the grid -> single-buffered residency.
    wspec = pl.BlockSpec((d, d), lambda i: (0, 0), pipeline_mode=pl.Buffered(1))

    # TODO(synk): tile the query/kv dims (online softmax) for long sequences so the
    # (H, S, S) scores plus four resident d x d weights stay inside v7x's 64 MiB.
    return pl.pallas_call(
        functools.partial(_attn_sublayer_kernel, n_heads=n_heads, eps=eps),
        out_shape=jax.ShapeDtypeStruct((b, s, d), jnp.float32),
        grid_spec=pltpu.PrefetchScalarGridSpec(
            num_scalar_prefetch=0,
            grid=(b,),
            in_specs=[
                pl.BlockSpec(memory_space=pltpu.SMEM),                 # ln alpha (1,1)
                pl.BlockSpec(memory_space=pltpu.SMEM),                 # ln bias  (1,1)
                pl.BlockSpec((None, s, d), lambda i: (i, 0, 0)),       # x (S, D) per batch
                wspec, wspec, wspec, wspec,                            # wq wk wv wo (bf16)
            ],
            out_specs=pl.BlockSpec((None, s, d), lambda i: (i, 0, 0)),
        ),
        compiler_params=pltpu.CompilerParams(
            dimension_semantics=("parallel",),
            vmem_limit_bytes=_vmem_limit_bytes(),
        ),
    )(alpha_s, bias_s, x, *w16)


# ---------------------------------------------------------------------------
# Sub-layer 2: out = y1 + W2(relu(W1(norm2(y1)) + b1)) + b2   (row-tiled)
# ---------------------------------------------------------------------------
def _ffn_sublayer_kernel(alpha_ref, bias_ref, y_ref,
                         w1_ref, b1_ref, w2_ref, b2_ref, o_ref, *, eps: float):
    y = y_ref[...].astype(jnp.float32)                    # (row_tile, D)
    yn = _layernorm_f32(y, alpha_ref[0, 0], bias_ref[0, 0], eps)
    # Padded rows have diff == 0 -> LN(pad) == bias (finite); results sliced off.
    h = jnp.dot(yn.astype(jnp.bfloat16), w1_ref[...],
                preferred_element_type=jnp.float32) + b1_ref[...]
    h = jnp.maximum(h, 0.0)                               # relu; dropout == identity
    out = jnp.dot(h.astype(jnp.bfloat16), w2_ref[...],
                  preferred_element_type=jnp.float32) + b2_ref[...]
    o_ref[...] = y + out                                  # residual


def ffn_sublayer(y, ln_alpha, ln_bias, w1, b1, w2, b2, *, eps=1e-6):
    orig_shape = y.shape
    d = orig_shape[-1]
    d_ff = w1.shape[-1]
    y2 = y.reshape(-1, d)                                 # keep input dtype; cast in-kernel
    rows = y2.shape[0]

    vmem_limit = _vmem_limit_bytes()
    row_tile = _pick_row_tile(rows, d, d_ff, jnp.dtype(y2.dtype).itemsize, vmem_limit)
    padded = _round_up(rows, row_tile)
    if padded != rows:
        y2 = jnp.pad(y2, ((0, padded - rows), (0, 0)))

    alpha_s = jnp.asarray(ln_alpha, jnp.float32).reshape(1, 1)
    bias_s = jnp.asarray(ln_bias, jnp.float32).reshape(1, 1)
    w1_16 = jnp.asarray(w1, jnp.bfloat16)
    w2_16 = jnp.asarray(w2, jnp.bfloat16)
    b1_2 = jnp.asarray(b1, jnp.float32).reshape(1, d_ff)
    b2_2 = jnp.asarray(b2, jnp.float32).reshape(1, d)

    resident = pl.Buffered(1)                             # constant blocks, single-buffered
    # TODO(synk): if w1/w2 cannot stay resident (very large d_ff on v7x), add an
    # "arbitrary" grid axis over d_ff and accumulate the second matmul in scratch.
    out = pl.pallas_call(
        functools.partial(_ffn_sublayer_kernel, eps=eps),
        out_shape=jax.ShapeDtypeStruct((padded, d), jnp.float32),
        grid_spec=pltpu.PrefetchScalarGridSpec(
            num_scalar_prefetch=0,
            grid=(padded // row_tile,),
            in_specs=[
                pl.BlockSpec(memory_space=pltpu.SMEM),                 # ln alpha (1,1)
                pl.BlockSpec(memory_space=pltpu.SMEM),                 # ln bias  (1,1)
                pl.BlockSpec((row_tile, d), lambda i: (i, 0)),         # y rows
                pl.BlockSpec((d, d_ff), lambda i: (0, 0), pipeline_mode=resident),
                pl.BlockSpec((1, d_ff), lambda i: (0, 0), pipeline_mode=resident),
                pl.BlockSpec((d_ff, d), lambda i: (0, 0), pipeline_mode=resident),
                pl.BlockSpec((1, d), lambda i: (0, 0), pipeline_mode=resident),
            ],
            out_specs=pl.BlockSpec((row_tile, d), lambda i: (i, 0)),
        ),
        compiler_params=pltpu.CompilerParams(
            dimension_semantics=("parallel",),
            vmem_limit_bytes=vmem_limit,
        ),
    )(alpha_s, bias_s, y2, w1_16, b1_2, w2_16, b2_2)

    return out[:rows].reshape(orig_shape[:-1] + (d,))


# ---------------------------------------------------------------------------
# EncoderBlock forward
# ---------------------------------------------------------------------------
def encoder_block(x, src_mask, params, *, n_heads, eps: float = 1e-6):
    del src_mask  # masked_fill in the reference is not in-place -> mask is a no-op
    y1 = attention_sublayer(
        x, params["ln1_alpha"], params["ln1_bias"],
        params["wq"], params["wk"], params["wv"], params["wo"],
        n_heads=n_heads, eps=eps)
    return ffn_sublayer(
        y1, params["ln2_alpha"], params["ln2_bias"],
        params["w1"], params["b1"], params["w2"], params["b2"], eps=eps)


# ---------------------------------------------------------------------------
# Pure-JAX reference for sanity checking (full f32)
# ---------------------------------------------------------------------------
def _reference_encoder_block(x, src_mask, p, *, n_heads, eps):
    del src_mask

    def ln(z, a, b):
        zf = z.astype(jnp.float32)
        mean = jnp.mean(zf, axis=-1, keepdims=True)
        std = jnp.std(zf, axis=-1, keepdims=True, ddof=1)
        return a * (zf - mean) / (std + eps) + b

    batch, seq, d = x.shape
    dk = d // n_heads
    xf = x.astype(jnp.float32)
    xn = ln(x, p["ln1_alpha"][0], p["ln1_bias"][0])
    q = (xn @ p["wq"]).reshape(batch, seq, n_heads, dk).transpose(0, 2, 1, 3)
    k = (xn @ p["wk"]).reshape(batch, seq, n_heads, dk).transpose(0, 2, 1, 3)
    v = (xn @ p["wv"]).reshape(batch, seq, n_heads, dk).transpose(0, 2, 1, 3)
    s = q @ jnp.swapaxes(k, -1, -2) / math.sqrt(dk)
    a = jax.nn.softmax(s, axis=-1)
    o = (a @ v).transpose(0, 2, 1, 3).reshape(batch, seq, d)
    y1 = xf + o @ p["wo"]
    yn = ln(y1, p["ln2_alpha"][0], p["ln2_bias"][0])
    h = jnp.maximum(yn @ p["w1"] + p["b1"], 0.0)
    return y1 + (h @ p["w2"] + p["b2"])


if __name__ == "__main__":
    B, S, D, H, DFF = 2, 8, 32, 4, 64
    eps = 1e-6

    key = jax.random.PRNGKey(0)
    ks = jax.random.split(key, 9)
    wscale = 1.0 / math.sqrt(D)
    params = {
        "ln1_alpha": jnp.ones((1,), jnp.float32),
        "ln1_bias": jnp.zeros((1,), jnp.float32),
        "ln2_alpha": jnp.ones((1,), jnp.float32),
        "ln2_bias": jnp.zeros((1,), jnp.float32),
        "wq": jax.random.normal(ks[0], (D, D), jnp.float32) * wscale,
        "wk": jax.random.normal(ks[1], (D, D), jnp.float32) * wscale,
        "wv": jax.random.normal(ks[2], (D, D), jnp.float32) * wscale,
        "wo": jax.random.normal(ks[3], (D, D), jnp.float32) * wscale,
        "w1": jax.random.normal(ks[4], (D, DFF), jnp.float32) * wscale,
        "b1": jax.random.normal(ks[5], (DFF,), jnp.float32) * 0.1,
        "w2": jax.random.normal(ks[6], (DFF, D), jnp.float32) * (1.0 / math.sqrt(DFF)),
        "b2": jax.random.normal(ks[7], (D,), jnp.float32) * 0.1,
    }
    x = jax.random.normal(ks[8], (B, S, D), jnp.float32)
    src_mask = jnp.ones((B, 1, S, S), jnp.float32)   # no effect (matches reference bug)

    out = encoder_block(x, src_mask, params, n_heads=H, eps=eps)
    out = jax.block_until_ready(out)

    ref = _reference_encoder_block(x, src_mask, params, n_heads=H, eps=eps)
    assert out.shape == (B, S, D) and out.dtype == jnp.float32
    # bf16 MXU inputs (per perf review) widen the gap vs. the f32 reference slightly.
    assert jnp.allclose(out, ref, atol=2e-2, rtol=2e-2), float(jnp.max(jnp.abs(out - ref)))
    print("KERNEL_OK")
</pallas_src>

<mosaic_0001>
module attributes {stable_mosaic.version = 11 : i64} {
  func.func @_attn_sublayer_kernel(%arg0: i32, %arg1: memref<1x1xf32, #tpu.memory_space<smem>>, %arg2: memref<1x1xf32, #tpu.memory_space<smem>>, %arg3: memref<1x8x32xf32, #tpu.memory_space<vmem>>, %arg4: memref<32x32xbf16, #tpu.memory_space<vmem>>, %arg5: memref<32x32xbf16, #tpu.memory_space<vmem>>, %arg6: memref<32x32xbf16, #tpu.memory_space<vmem>>, %arg7: memref<32x32xbf16, #tpu.memory_space<vmem>>, %arg8: memref<1x8x32xf32, #tpu.memory_space<vmem>>) attributes {dimension_semantics = [#tpu.dimension_semantics<parallel>], iteration_bounds = array<i64: 2>, scalar_prefetch = 0 : i64, scratch_operands = 0 : i64, tpu.core_type = #tpu.core_type<tc>, window_params = [{transform_indices = @transform_0, window_bounds = array<i64: 1, 1>}, {transform_indices = @transform_1, window_bounds = array<i64: 1, 1>}, {transform_indices = @transform_2, window_bounds = array<i64: 1, 8, 32>}, {pipeline_mode = #tpu.pipeline_mode<synchronous>, transform_indices = @transform_3, window_bounds = array<i64: 32, 32>}, {pipeline_mode = #tpu.pipeline_mode<synchronous>, transform_indices = @transform_4, window_bounds = array<i64: 32, 32>}, {pipeline_mode = #tpu.pipeline_mode<synchronous>, transform_indices = @transform_5, window_bounds = array<i64: 32, 32>}, {pipeline_mode = #tpu.pipeline_mode<synchronous>, transform_indices = @transform_6, window_bounds = array<i64: 32, 32>}, {transform_indices = @transform_7, window_bounds = array<i64: 1, 8, 32>}]} {
    %c0 = arith.constant 0 : index
    %c0_0 = arith.constant 0 : index
    %c0_1 = arith.constant 0 : index
    %0 = vector.load %arg3[%c0, %c0_0, %c0_1] : memref<1x8x32xf32, #tpu.memory_space<vmem>>, vector<1x8x32xf32>
    %1 = vector.shape_cast %0 : vector<1x8x32xf32> to vector<8x32xf32>
    %c0_2 = arith.constant 0 : index
    %c0_3 = arith.constant 0 : index
    %2 = memref.load %arg1[%c0_2, %c0_3] : memref<1x1xf32, #tpu.memory_space<smem>>
    %c0_4 = arith.constant 0 : index
    %c0_5 = arith.constant 0 : index
    %3 = memref.load %arg2[%c0_4, %c0_5] : memref<1x1xf32, #tpu.memory_space<smem>>
    %cst = arith.constant dense<0.000000e+00> : vector<8xf32>
    %4 = vector.multi_reduction <add>, %1, %cst [1] : vector<8x32xf32> to vector<8xf32>
    %5 = vector.shape_cast %4 : vector<8xf32> to vector<8x1xf32>
    %cst_6 = arith.constant 3.200000e+01 : f32
    %6 = vector.broadcast %cst_6 : f32 to vector<8x1xf32>
    %7 = arith.divf %5, %6 : vector<8x1xf32>
    %8 = vector.broadcast %7 : vector<8x1xf32> to vector<8x32xf32>
    %9 = arith.subf %1, %8 : vector<8x32xf32>
    %10 = arith.mulf %9, %9 : vector<8x32xf32>
    %cst_7 = arith.constant dense<0.000000e+00> : vector<8xf32>
    %11 = vector.multi_reduction <add>, %10, %cst_7 [1] : vector<8x32xf32> to vector<8xf32>
    %12 = vector.shape_cast %11 : vector<8xf32> to vector<8x1xf32>
    %cst_8 = arith.constant 0.0322580636 : f32
    %13 = vector.broadcast %cst_8 : f32 to vector<8x1xf32>
    %14 = arith.mulf %12, %13 : vector<8x1xf32>
    %15 = math.sqrt %14 : vector<8x1xf32>
    %cst_9 = arith.constant 9.99999997E-7 : f32
    %16 = vector.broadcast %cst_9 : f32 to vector<8x1xf32>
    %17 = arith.addf %15, %16 : vector<8x1xf32>
    %18 = tpu.reciprocal %17 {approx = true} : vector<8x1xf32> -> vector<8x1xf32>
    %19 = vector.broadcast %2 : f32 to vector<8x1xf32>
    %20 = arith.mulf %19, %18 : vector<8x1xf32>
    %21 = vector.broadcast %20 : vector<8x1xf32> to vector<8x32xf32>
    %22 = arith.mulf %21, %9 : vector<8x32xf32>
    %23 = vector.broadcast %3 : f32 to vector<8x32xf32>
    %24 = arith.addf %22, %23 : vector<8x32xf32>
    %25 = arith.truncf %24 : vector<8x32xf32> to vector<8x32xbf16>
    %c0_10 = arith.constant 0 : index
    %c0_11 = arith.constant 0 : index
    %26 = vector.load %arg4[%c0_10, %c0_11] : memref<32x32xbf16, #tpu.memory_space<vmem>>, vector<32x32xbf16>
    %cst_12 = arith.constant dense<0.000000e+00> : vector<8x32xf32>
    %27 = tpu.matmul %25, %26, %cst_12 {dimension_numbers = #tpu.dot_dimension_numbers<[1], [0], [0], [1], [0, 0, 1, 1], [], []>} : vector<8x32xbf16>, vector<32x32xbf16>, vector<8x32xf32> -> vector<8x32xf32>
    %c0_13 = arith.constant 0 : index
    %c0_14 = arith.constant 0 : index
    %28 = vector.load %arg5[%c0_13, %c0_14] : memref<32x32xbf16, #tpu.memory_space<vmem>>, vector<32x32xbf16>
    %cst_15 = arith.constant dense<0.000000e+00> : vector<8x32xf32>
    %29 = tpu.matmul %25, %28, %cst_15 {dimension_numbers = #tpu.dot_dimension_numbers<[1], [0], [0], [1], [0, 0, 1, 1], [], []>} : vector<8x32xbf16>, vector<32x32xbf16>, vector<8x32xf32> -> vector<8x32xf32>
    %c0_16 = arith.constant 0 : index
    %c0_17 = arith.constant 0 : index
    %30 = vector.load %arg6[%c0_16, %c0_17] : memref<32x32xbf16, #tpu.memory_space<vmem>>, vector<32x32xbf16>
    %cst_18 = arith.constant dense<0.000000e+00> : vector<8x32xf32>
    %31 = tpu.matmul %25, %30, %cst_18 {dimension_numbers = #tpu.dot_dimension_numbers<[1], [0], [0], [1], [0, 0, 1, 1], [], []>} : vector<8x32xbf16>, vector<32x32xbf16>, vector<8x32xf32> -> vector<8x32xf32>
    %cst_19 = arith.constant 0.353553385 : f32
    %32 = vector.broadcast %cst_19 : f32 to vector<8x32xf32>
    %33 = arith.mulf %27, %32 : vector<8x32xf32>
    %34 = vector.shape_cast %33 : vector<8x32xf32> to vector<8x4x8xf32>
    %35 = tpu.transpose %34, [1, 0, 2] : vector<8x4x8xf32> -> vector<4x8x8xf32>
    %36 = arith.truncf %35 : vector<4x8x8xf32> to vector<4x8x8xbf16>
    %37 = vector.shape_cast %29 : vector<8x32xf32> to vector<8x4x8xf32>
    %38 = tpu.transpose %37, [1, 0, 2] : vector<8x4x8xf32> -> vector<4x8x8xf32>
    %39 = arith.truncf %38 : vector<4x8x8xf32> to vector<4x8x8xbf16>
    %40 = vector.shape_cast %31 : vector<8x32xf32> to vector<8x4x8xf32>
    %41 = tpu.transpose %40, [1, 0, 2] : vector<8x4x8xf32> -> vector<4x8x8xf32>
    %42 = arith.truncf %41 : vector<4x8x8xf32> to vector<4x8x8xbf16>
    "tpu.trace_start"() <{level = 10 : i32, message = "hqd,hkd->hqk"}> : () -> ()
    %cst_20 = arith.constant dense<0.000000e+00> : vector<4x8x8xf32>
    %43 = tpu.matmul %36, %39, %cst_20 {dimension_numbers = #tpu.dot_dimension_numbers<[2], [2], [1], [1], [0, 0, 0, 1, 1, 1], [0], [0]>} : vector<4x8x8xbf16>, vector<4x8x8xbf16>, vector<4x8x8xf32> -> vector<4x8x8xf32>
    "tpu.trace_stop"() : () -> ()
    %cst_21 = arith.constant dense<0xFF800000> : vector<4x8xf32>
    %44 = vector.multi_reduction <maximumf>, %43, %cst_21 [2] : vector<4x8x8xf32> to vector<4x8xf32>
    %45 = vector.shape_cast %44 : vector<4x8xf32> to vector<4x8x1xf32>
    %46 = vector.broadcast %45 : vector<4x8x1xf32> to vector<4x8x8xf32>
    %47 = arith.subf %43, %46 : vector<4x8x8xf32>
    %48 = math.exp %47 : vector<4x8x8xf32>
    %cst_22 = arith.constant dense<0.000000e+00> : vector<4x8xf32>
    %49 = vector.multi_reduction <add>, %48, %cst_22 [2] : vector<4x8x8xf32> to vector<4x8xf32>
    %50 = vector.shape_cast %49 : vector<4x8xf32> to vector<4x8x1xf32>
    %51 = tpu.reciprocal %50 {approx = true} : vector<4x8x1xf32> -> vector<4x8x1xf32>
    %52 = vector.broadcast %51 : vector<4x8x1xf32> to vector<4x8x8xf32>
    %53 = arith.mulf %48, %52 : vector<4x8x8xf32>
    %54 = arith.truncf %53 : vector<4x8x8xf32> to vector<4x8x8xbf16>
    "tpu.trace_start"() <{level = 10 : i32, message = "hqk,hkd->hqd"}> : () -> ()
    %cst_23 = arith.constant dense<0.000000e+00> : vector<4x8x8xf32>
    %55 = tpu.matmul %54, %42, %cst_23 {dimension_numbers = #tpu.dot_dimension_numbers<[2], [1], [1], [2], [0, 0, 0, 1, 1, 2], [0], [0]>} : vector<4x8x8xbf16>, vector<4x8x8xbf16>, vector<4x8x8xf32> -> vector<4x8x8xf32>
    "tpu.trace_stop"() : () -> ()
    %56 = tpu.transpose %55, [1, 0, 2] : vector<4x8x8xf32> -> vector<8x4x8xf32>
    %57 = vector.shape_cast %56 : vector<8x4x8xf32> to vector<8x32xf32>
    %58 = arith.truncf %57 : vector<8x32xf32> to vector<8x32xbf16>
    %c0_24 = arith.constant 0 : index
    %c0_25 = arith.constant 0 : index
    %59 = vector.load %arg7[%c0_24, %c0_25] : memref<32x32xbf16, #tpu.memory_space<vmem>>, vector<32x32xbf16>
    %cst_26 = arith.constant dense<0.000000e+00> : vector<8x32xf32>
    %60 = tpu.matmul %58, %59, %cst_26 {dimension_numbers = #tpu.dot_dimension_numbers<[1], [0], [0], [1], [0, 0, 1, 1], [], []>} : vector<8x32xbf16>, vector<32x32xbf16>, vector<8x32xf32> -> vector<8x32xf32>
    %61 = arith.addf %1, %60 : vector<8x32xf32>
    %c0_27 = arith.constant 0 : index
    %c0_28 = arith.constant 0 : index
    %c0_29 = arith.constant 0 : index
    %62 = vector.load %arg8[%c0_27, %c0_28, %c0_29] : memref<1x8x32xf32, #tpu.memory_space<vmem>>, vector<1x8x32xf32>
    %63 = vector.shape_cast %62 : vector<1x8x32xf32> to vector<8x32xf32>
    %64 = vector.shape_cast %61 : vector<8x32xf32> to vector<1x8x32xf32>
    tpu.vector_store %arg8[%c0_27, %c0_28, %c0_29], %64 {strides = array<i32>} : memref<1x8x32xf32, #tpu.memory_space<vmem>>, vector<1x8x32xf32>,
    return
  }
  func.func @transform_0(%arg0: i32) -> (i32, i32) {
    %c0_i32 = arith.constant 0 : i32
    %c0_i32_0 = arith.constant 0 : i32
    %c0_i32_1 = arith.constant 0 : i32
    return %c0_i32, %c0_i32_0 : i32, i32
  }
  func.func @transform_1(%arg0: i32) -> (i32, i32) {
    %c0_i32 = arith.constant 0 : i32
    %c0_i32_0 = arith.constant 0 : i32
    %c0_i32_1 = arith.constant 0 : i32
    return %c0_i32, %c0_i32_0 : i32, i32
  }
  func.func @transform_2(%arg0: i32) -> (i32, i32, i32) {
    %c0_i32 = arith.constant 0 : i32
    %c0_i32_0 = arith.constant 0 : i32
    %c0_i32_1 = arith.constant 0 : i32
    return %arg0, %c0_i32, %c0_i32_0 : i32, i32, i32
  }
  func.func @transform_3(%arg0: i32) -> (i32, i32) {
    %c0_i32 = arith.constant 0 : i32
    %c0_i32_0 = arith.constant 0 : i32
    %c0_i32_1 = arith.constant 0 : i32
    return %c0_i32, %c0_i32_0 : i32, i32
  }
  func.func @transform_4(%arg0: i32) -> (i32, i32) {
    %c0_i32 = arith.constant 0 : i32
    %c0_i32_0 = arith.constant 0 : i32
    %c0_i32_1 = arith.constant 0 : i32
    return %c0_i32, %c0_i32_0 : i32, i32
  }
  func.func @transform_5(%arg0: i32) -> (i32, i32) {
    %c0_i32 = arith.constant 0 : i32
    %c0_i32_0 = arith.constant 0 : i32
    %c0_i32_1 = arith.constant 0 : i32
    return %c0_i32, %c0_i32_0 : i32, i32
  }
  func.func @transform_6(%arg0: i32) -> (i32, i32) {
    %c0_i32 = arith.constant 0 : i32
    %c0_i32_0 = arith.constant 0 : i32
    %c0_i32_1 = arith.constant 0 : i32
    return %c0_i32, %c0_i32_0 : i32, i32
  }
  func.func @transform_7(%arg0: i32) -> (i32, i32, i32) {
    %c0_i32 = arith.constant 0 : i32
    %c0_i32_0 = arith.constant 0 : i32
    %c0_i32_1 = arith.constant 0 : i32
    return %arg0, %c0_i32, %c0_i32_0 : i32, i32, i32
  }
}

</mosaic_0001>

<bundles_post_ra>
// kernel: tpu_custom_call.1
= control target key start
LH: loop header
LB: loop body
LE: loop exit
PB: predicated region body
PF: predicated region fallthrough
CT: control target
= control target key end

     0   :  { %s2241_s0 = inlined_call_operand.<no memory space> [shape: f32[1,1], index: 0, kind: input, shape index: {}]   ;;  %s2242_s1 = inlined_call_operand.<no memory space> [shape: f32[1,1], index: 1, kind: input, shape index: {}]   ;;  %s2243_s2 = inlined_call_operand.hbm [shape: f32[2,8,32], index: 2, kind: input, shape index: {}]   ;;  %s2244_s3 = inlined_call_operand.hbm [shape: bf16[32,32], index: 3, kind: input, shape index: {}]   ;;  %s2245_s4 = inlined_call_operand.hbm [shape: bf16[32,32], index: 4, kind: input, shape index: {}]   ;;  %s2246_s5 = inlined_call_operand.hbm [shape: bf16[32,32], index: 5, kind: input, shape index: {}]   ;;  %s2247_s6 = inlined_call_operand.hbm [shape: bf16[32,32], index: 6, kind: input, shape index: {}]   ;;  %s2248_s7 = inlined_call_operand.hbm [shape: f32[2,8,32], index: 7, kind: output, shape index: {}]  }
   0x1   :  { %12 = sst [smem:[#allocation2]] %s2241_s0 }
   0x2   :  { %13 = sst [smem:[#allocation3]] %s2242_s1 }
   0x3   :  { %14 = vsyncpa [#allocation5], 0 }
   0x4   :  { %16 = vsyncpa [#allocation5 + $0x1], 0 }
   0x5   :  { %17 = vsyncpa [#allocation8], 0 }
   0x6   :  { %18 = vsyncpa [#allocation11], 0 }
   0x7   :  { %19 = vsyncpa [#allocation6], 0 }
   0x8   :  { %21 = vsyncpa [#allocation6 + $0x1], 0  ;;  %s1837_s28 = smov 0   ;;  %s1839_s29 = smov 0  }
   0x9   :  { %s1841_s30 = smov 0   ;;  %s1843_s8 = smov 0  }
   0xa LB: > { %s227_s9 = sshll.u32 %s2244_s3, 4  ;;  %s1861_s10 = sadd.s32 4294967295, %s1774_s8   ;;  %s1774_s8 = sphi %s1843_s8, %s2260_s8   ;;  %s1770_s30 = sphi %s1841_s30, %s2259_s30   ;;  %s1766_s29 = sphi %s1839_s29, %s2258_s29   ;;  %s1762_s28 = sphi %s1837_s28, %s2257_s28   ;;  %s228_s9 = int_to_ptr.hbm [resolvable:$true] %s227_s9 }
   0xb   : > { %p1359_p0 = scmp.ge.s32.totalorder %s1774_s8, 1  ;;  %p90_p1 = scmp.eq.s32.totalorder %s1861_s10, 0 }
   0xc   : > { %p210_p2 = scmp.lt.s32.totalorder %s1774_s8, 3  ;;  %s1776_s12 = smov [#allocation7]  }
   0xd   : > { %s229_s13 = sshll.u32 %s1776_s12, 4  ;;  %s255_s16 = sshll.u32 %s2246_s5, 4  ;;  %s230_s13 = int_to_ptr.vmem [resolvable:$true] %s229_s13  ;;  %s256_s16 = int_to_ptr.hbm [resolvable:$true] %s255_s16 }
   0xe   : > { %p1866_p3 = pnand %p1359_p0, %p210_p2  ;;  %s241_s20 = sshll.u32 %s2245_s4, 4  ;;  %s242_s20 = int_to_ptr.hbm [resolvable:$true] %s241_s20 }
   0xf   : > { %s1777_s21 = smov [#allocation10]   ;;  %s1778_s23 = smov 64  }
  0x10   : > { %p1450_p4 = pneg %p1866_p3  ;;  %s257_s22 = sshll.u32 %s1777_s21, 4  ;;  %s258_s22 = int_to_ptr.vmem [resolvable:$true] %s257_s22 }
  0x11   : > { %s1779_s24 = smov 4   ;;  %s269_s27 = sshll.u32 %s2247_s6, 4  ;;  %s270_s27 = int_to_ptr.hbm [resolvable:$true] %s269_s27 }
  0x12   : > { %p1878_p6 = pnand %p1450_p4, %p90_p1  ;;  %s1780_s0 = smov [#allocation9]  }
  0x13   : > { %s243_s1 = sshll.u32 %s1780_s0, 4  ;;  %s1898_s14 = sadd.s32 1, %s1774_s8   ;;  %s244_s1 = int_to_ptr.vmem [resolvable:$true] %s243_s1 }
  0x14   : > { %1453 = dma.hbm_to_vmem [thread:$0]  (!%p1878_p6), %s228_s9, 256, %s230_s13, [#allocation8], %s1778_s23, %s1778_s23, %s1779_s24  }
  0x15   : > { %1459 = dma.hbm_to_vmem [thread:$0]  (!%p1878_p6), %s256_s16, 256, %s258_s22, [#allocation11], %s1778_s23, %s1778_s23, %s1779_s24  }
  0x16   : > { %1456 = dma.hbm_to_vmem [thread:$0]  (!%p1878_p6), %s242_s20, 256, %s244_s1, [#allocation8], %s1778_s23, %s1778_s23, %s1779_s24  }
  0x17   : > { %s1781_s9 = smov [#allocation12]   ;;  %s1358_s13 = sadd.s32 4294967294, %s1774_s8  }
  0x18   : > { %s271_s12 = sshll.u32 %s1781_s9, 4  ;;  %s73_s15 = ssub.s32 %s1774_s8, %s1898_s14  ;;  %s272_s12 = int_to_ptr.vmem [resolvable:$true] %s271_s12 }
  0x19   : > { %1462 = dma.hbm_to_vmem [thread:$0]  (!%p1878_p6), %s270_s27, 256, %s272_s12, [#allocation11], %s1778_s23, %s1778_s23, %s1779_s24  }
  0x1a   : > { %s76_s16 = sadd.s32 1, %s1770_s30  ;;  %p74_p7 = scmp.eq.s32.totalorder %s73_s15, 0 }
  0x1b   : > { %p83_p8 = scmp.ne.s32.totalorder %s1770_s30, %s1766_s29  ;;  %p84_p9 = scmp.eq.s32.totalorder %s1774_s8, 0 }
  0x1c   : > { %p89_p10 = scmp.ne.s32.totalorder %s1766_s29, %s1762_s28  ;;  %p197_p13 = scmp.eq.s32.totalorder %s1861_s10, 1 }
  0x1d   : > { %s1909_s18 = scalar_select %p74_p7, %s1770_s30, %s76_s16  }
  0x1e   : > { %p1911_p11 = por %p84_p9, %p83_p8  ;;  %p1917_p12 = por %p90_p1, %p89_p10 }
  0x1f   : > { %p203_p0 = scmp.eq.s32.totalorder %s1358_s13, 1  ;;  %p1475_p2 = scmp.lt.s32.totalorder %s1774_s8, 2 }
  0x20   : > { %s285_s20 = sand.u32 1, %s1770_s30   ;;  %p1924_p4 = por %p197_p13, %p83_p8 }
  0x21   : > { %p1928_p6 = por %p203_p0, %p89_p10  ;;  %s1365_s23 = sshll.u32 %s285_s20, 3 }
  0x22   : > { %s1366_s24 = sshll.u32 %s1774_s8, 3  ;;  %s289_s0 = scalar_lea.vmem [#allocation4], %s1365_s23 }
  0x23   : > { %s293_s27 = scalar_lea.hbm %s2243_s2, %s1366_s24  ;;  %s297_s1 = sshll.u32 %s289_s0, 4  ;;  %s298_s1 = int_to_ptr.vmem [resolvable:$true] %s297_s1 }
  0x24   : > { %s295_s9 = sshll.u32 %s293_s27, 4  ;;  %p1938_p7 = pnand %p1475_p2, %p1911_p11  ;;  %s296_s9 = int_to_ptr.hbm [resolvable:$true] %s295_s9 }
  0x25   : > { %s286_s13 = scalar_lea.sflag [#allocation5], %s285_s20  ;;  %s1670_s15 = sshra.s32 %s296_s9, 4  ;;  %s1671_s15 = int_to_ptr.hbm [resolvable:$true] %s1670_s15 }
  0x26   : > { %s1672_s16 = scalar_lea.hbm %s1671_s15, 8  ;;  %p1674_p9 = pneg %p1938_p7 }
  0x27   : > { %p1673_p8 = scmp.ne.s32.totalorder %s1671_s15, %s1672_s16  ;;  %s1677_s25 = scalar_lea.hbm %s2243_s2, 16 }
  0x28   : > { %p1678_p11 = scmp.lt.s32.totalorder %s1671_s15, %s2243_s2  ;;  %p1679_p0 = scmp.lt.s32.totalorder %s1677_s25, %s1672_s16 }
  0x29   : > { %p1675_p10 = pnand %p1674_p9, %p1673_p8 }
  0x2a   : > { %p1680_p2 = por %p1679_p0, %p1678_p11 }
  0x2b   : > { %p1676_p13 = pneg %p1675_p10 }
  0x2d   : > { %p1681_p5 = pnand %p1680_p2, %p1676_p13 }
  0x2f   : > { %1684 = shalt.err (!%p1681_p5)
}
  0x30   : > { %1466 = dma.hbm_to_vmem [thread:$0]  (!%p1938_p7), %s296_s9, 128, %s298_s1, %s286_s13  }
  0x31   : > { %306 = sbr.rel (%p1866_p3) target bundleno = 1435 (0x59b), region = 48  ;;  %s1955_s20 = sand.u32 (!%p1866_p3), 1, %s1766_s29  }
  0x32   : > { %s1368_s27 = sshll.u32 (!%p1866_p3), %s1955_s20, 3  ;;  %s309_s0 = scalar_lea.sflag (!%p1866_p3), [#allocation5], %s1955_s20 }
  0x33   : > { %s312_s15 = scalar_lea.vmem (!%p1866_p3), [#allocation4], %s1368_s27 }
  0x36   : > { %1745 = dma.done.wait (%p1917_p12), %s309_s0, 128  }
  0x37   : > { %1747 = vsyncadd (%p1917_p12), %s309_s0, 4294967168 }
  0x38   : > { %1749 = dma.done.wait (%p90_p1), [#allocation8], 512  }
  0x39   : > { %1751 = vsyncadd (%p90_p1), [#allocation8], 4294966784 }
  0x3a   : > { %1753 = dma.done.wait (%p90_p1), [#allocation11], 512  }
  0x3b   : > { %1755 = vsyncadd (%p90_p1), [#allocation11], 4294966784  ;;  %vm368_vm0 = vcmask 261120   ;;  %v1973_v0 = vld [vmem:[%s312_s15] sm:$0xff]  ;;  %v1782_v2 = vmov 32.0   ;;  %v1423_v14 = vld [vmem:[#allocation7 + $0x8] sm:$0xff] }
  0x3c   : > { %v369_v1 = vsel %vm368_vm0, %v1973_v0, 0.0  ;;  %1528 = vrcp.f32 %v1782_v2  ;;  %v1425_v15 = vld [vmem:[#allocation9 + $0x8] sm:$0xff]  ;;  %v1427_v16 = vld [vmem:[#allocation10 + $0x8] sm:$0xff]  ;;  %431 = vmatpush.bf16.msra.mxu0 %v1423_v14  ;;  %v1422_v17 = vld [vmem:[#allocation7] sm:$0xff]  ;;  %s366_s11 = sld [smem:[#allocation2]]  ;;  %s1783_s1 = smov 104  }
  0x3d   : > { %370 = vadd.xlane.f32.xlu0 %v369_v1  ;;  %460 = vmatpush.bf16.msra.mxu1 %v1425_v15  ;;  %v1424_v18 = vld [vmem:[#allocation9] sm:$0xff]  ;;  %v1426_v19 = vld [vmem:[#allocation10] sm:$0xff]  ;;  %s367_s17 = sld [smem:[#allocation3]]  ;;  %s1784_s9 = smov 120   ;;  %v1786_v48 = vmov 1983009808  }
  0x3e   : > { %489 = vmatpush.bf16.msra.mxu2 %v1427_v16  ;;  %s1785_s12 = smov 112   ;;  %v513_v49 = vunpack.c.l.s4 %v1786_v48  ;;  %vm508_vm4 = vcmask 1047556   ;;  %v1787_v57 = vmov 1934713408   ;;  %vm870_vm5 = vcmask 64512   ;;  %s1788_s13 = smov 24  }
  0x3f   : > { %v537_v58 = vunpack.c.l.s4 %v1787_v57  ;;  %vm998_vm6 = vcmask 1043456   ;;  %s1789_s16 = smov 16   ;;  %s1790_s23 = smov 8   ;;  %vm1195_vm7 = vcmask 130048   ;;  %vm1197_vm8 = vcmask 195584  }
  0x40   : > { %432 = vmatpush.bf16.msra.mxu0 %v1422_v17  ;;  %v1991_v54 = vunpack.c.0.s8 %v513_v49  ;;  %s1419_s24 = sshll.u32 %s1861_s10, 3  ;;  %s363_s0 = scalar_lea.vmem [#allocation13], %s1368_s27 }
  0x41   : > { %461 = vmatpush.bf16.msra.mxu1 %v1424_v18  ;;  %v1996_v2 = vunpack.c.0.s8 %v537_v58  ;;  %s1245_s19 = scalar_lea.hbm %s2248_s7, %s1419_s24  ;;  %s1247_s15 = sshll.u32 %s363_s0, 4  ;;  %s1248_s15 = int_to_ptr.vmem [resolvable:$true] %s1247_s15 }
  0x42   : > { %v1529_v3 = vpop.eup %1528  ;;  %490 = vmatpush.bf16.msra.mxu2 %v1426_v19  ;;  %v400_v33 = vstv %s366_s11  ;;  %s1249_s11 = sshll.u32 %s1245_s19, 4  ;;  %s1720_s27 = scalar_lea.hbm %s2248_s7, 16  ;;  %s1250_s11 = int_to_ptr.hbm [resolvable:$true] %s1249_s11 }
  0x43   : > { %v373_v4 = vmul.f32 32.0, %v1529_v3  ;;  %vm377_vm1 = vweird.f32 %v1529_v3  ;;  %v403_v36 = vstv %s367_s17  ;;  %s1235_s17 = scalar_lea.sflag [#allocation6], %s1955_s20 }
  0x45   : > { %v374_v5 = vsub.f32 1.0, %v373_v4 }
  0x47   : > { %v375_v6 = vmul.f32 %v1529_v3, %v374_v5 }
  0x49   : > { %v376_v7 = vadd.f32 %v1529_v3, %v375_v6 }
  0x4b   : > { %v378_v8 = vsel %vm377_vm1, %v1529_v3, %v376_v7 }
  0xb0   : > { %v371_v9 = vpop.xlane.xlu0 %370 }
  0xb1   : > { %v379_v10 = vmul.f32 %v378_v8, %v371_v9 }
  0xb3   : > { %v380_v11 = vsub.f32 %v1973_v0, %v379_v10 }
  0xb5   : > { %v381_v12 = vmul.f32 %v380_v11, %v380_v11 }
  0xb7   : > { %v382_v13 = vsel %vm368_vm0, %v381_v12, 0.0 }
  0xb8   : > { %383 = vadd.xlane.f32.xlu0 %v382_v13 }
 0x12b   : > { %v384_v20 = vpop.xlane.xlu0 %383 }
 0x12c   : > { %v385_v21 = vmul.f32 0.032258064, %v384_v20 }
 0x12e   : > { %1530 = vrsqrt.f32 %v385_v21  ;;  %vm393_vm2 = vcmp.eq.f32.partialorder %v385_v21, inf  ;;  %v396_v29 = vand.u32 2147483648, %v385_v21  ;;  %vm395_vm3 = vcmp.eq.f32.partialorder %v385_v21, 0.0 }
 0x134   : > { %v1531_v22 = vpop.eup %1530 }
 0x135   : > { %v387_v23 = vmul.f32 %v1531_v22, %v385_v21 }
 0x137   : > { %v388_v24 = vmul.f32 %v1531_v22, %v387_v23 }
 0x139   : > { %v389_v25 = vmul.f32 0.5, %v388_v24 }
 0x13b   : > { %v390_v26 = vsub.f32 1.5, %v389_v25 }
 0x13d   : > { %v391_v27 = vmul.f32 %v1531_v22, %v390_v26 }
 0x13f   : > { %v392_v28 = vmul.f32 %v391_v27, %v385_v21 }
 0x141   : > { %v394_v30 = vsel %vm393_vm2, %v385_v21, %v392_v28 }
 0x142   : > { %v397_v31 = vsel %vm395_vm3, %v396_v29, %v394_v30 }
 0x143   : > { %v398_v32 = vadd.f32 1e-06, %v397_v31 }
 0x145   : > { %1532 = vrcp.f32 %v398_v32 }
 0x14b   : > { %v1533_v34 = vpop.eup %1532 }
 0x14c   : > { %v401_v35 = vmul.f32 %v1533_v34, %v400_v33 }
 0x14e   : > { %v402_v37 = vmul.f32 %v401_v35, %v380_v11 }
 0x150   : > { %v404_v38 = vadd.f32 %v403_v36, %v402_v37 }
 0x152   : > { %v405_v39 = vpack.c.bf16 %v404_v38, %v404_v38 }
 0x154   : > { %1382 = vmatmul.msk.bf16.vlgmr.msra.gmra.mxu0 %vm368_vm0, %v405_v39  ;;  %1391 = vmatmul.msk.bf16.vlgmr.msra.gmra.mxu1 %vm368_vm0, %v405_v39 }
 0x155   : > { %1400 = vmatmul.msk.bf16.vlgmr.msra.gmra.mxu2 %vm368_vm0, %v405_v39 }
 0x1d1   : > { %v434_v40 = vpop.f32.mrf.mxu0  ;;  %v463_v41 = vpop.f32.mrf.mxu1 }
 0x1d2   : > { %v496_v42 = vmul.f32 0.35355338, %v434_v40  ;;  %629 = vrot.lane.b32.xlu2 %v463_v41, %s1783_s1  ;;  %623 = vrot.lane.b32.xlu1 %v463_v41, %s1784_s9  ;;  %v634_v61 = vrot.slane %v463_v41, 4 }
 0x1d4   : > { %501 = vrot.lane.b32.xlu0 %v496_v42, %s1785_s12  ;;  %v510_v63 = vrot.slane %v496_v42, 4 }
 0x1d8   : > { %v1985_v43 = vpop.f32.mrf.mxu2 }
 0x1d9   : > { %v436_v44 = vpop.f32.mrf.mxu0  ;;  %v465_v45 = vpop.f32.mrf.mxu1 }
 0x1da   : > { %626 = vrot.lane.b32.xlu1 %v463_v41, %s1785_s12  ;;  %498 = vrot.lane.b32.xlu2 %v496_v42, %s1784_s9 }
 0x1e0   : > { %v494_v46 = vpop.f32.mrf.mxu2 }
 0x1e2   : > { %504 = vrot.lane.b32.xlu1 %v496_v42, %s1783_s1 }
 0x22c   : > { %v630_v47 = vpop.permute.xlu2 %629 }
 0x22d   : > { %v644_v52 = vrot.slane %v630_v47, 4 }
 0x234   : > { %v499_v14 = vpop.permute.xlu2 %498 }
 0x235   : > { %v522_v24 = vrot.slane %v499_v14, 4 }
 0x244   : > { %v624_v50 = vpop.permute.xlu1 %623 }
 0x245   : > { %v646_v51 = vrot.slane %v624_v50, 4  ;;  %v645_v56 = vsel %vm508_vm4, %v644_v52, %v624_v50 }
 0x246   : > { %v502_v55 = vpop.permute.xlu0 %501  ;;  %v651_v62 = vperm.slane %v645_v56, %v1991_v54 }
 0x247   : > { %v647_v53 = vsel %vm508_vm4, %v630_v47, %v646_v51  ;;  %v507_v60 = vrot.slane %v502_v55, 4  ;;  %v511_v6 = vsel %vm508_vm4, %v502_v55, %v510_v63 }
 0x248   : > { %v655_v59 = vperm.slane %v647_v53, %v1991_v54  ;;  %v656_v10 = vrot.slane %v651_v62, 4  ;;  %v519_v15 = vperm.slane %v511_v6, %v1991_v54 }
 0x249   : > { %v509_v8 = vsel %vm508_vm4, %v507_v60, %v496_v42 }
 0x24a   : > { %v668_v5 = vrot.slane %v655_v59, 4  ;;  %v515_v17 = vperm.slane %v509_v8, %v1991_v54  ;;  %v546_v27 = vrot.slane %v519_v15, 4 }
 0x24c   : > { %v627_v1 = vpop.permute.xlu1 %626  ;;  %v534_v31 = vrot.slane %v515_v17, 4 }
 0x24d   : > { %v632_v3 = vrot.slane %v627_v1, 4  ;;  %v635_v4 = vsel %vm508_vm4, %v627_v1, %v634_v61 }
 0x24e   : > { %v643_v7 = vperm.slane %v635_v4, %v1991_v54 }
 0x24f   : > { %v633_v9 = vsel %vm508_vm4, %v632_v3, %v463_v41 }
 0x250   : > { %v639_v11 = vperm.slane %v633_v9, %v1991_v54  ;;  %v669_v12 = vsel %vm508_vm4, %v668_v5, %v643_v7  ;;  %v670_v13 = vrot.slane %v643_v7, 4 }
 0x251   : > { %v675_v16 = vperm.slane %v669_v12, %v1996_v2 }
 0x252   : > { %v657_v18 = vsel %vm508_vm4, %v656_v10, %v639_v11  ;;  %v658_v19 = vrot.slane %v639_v11, 4  ;;  %v671_v20 = vsel %vm508_vm4, %v655_v59, %v670_v13 }
 0x253   : > { %v663_v21 = vperm.slane %v657_v18, %v1996_v2  ;;  %v679_v22 = vperm.slane %v671_v20, %v1996_v2  ;;  %v684_v23 = vrot.slane %v675_v16, 4 }
 0x254   : > { %v659_v25 = vsel %vm508_vm4, %v651_v62, %v658_v19  ;;  %v505_v26 = vpop.permute.xlu1 %504 }
 0x255   : > { %v667_v28 = vperm.slane %v659_v25, %v1996_v2  ;;  %v680_v29 = vrot.slane %v663_v21, 4  ;;  %v686_v30 = vrot.slane %v679_v22, 4  ;;  %v685_v32 = vsel %vm508_vm4, 0.0, %v684_v23 }
 0x256   : > { %v520_v33 = vrot.slane %v505_v26, 4  ;;  %v523_v34 = vsel %vm508_vm4, %v505_v26, %v522_v24 }
 0x257   : > { %v682_v35 = vrot.slane %v667_v28, 4  ;;  %v687_v36 = vsel %vm508_vm4, 0.0, %v686_v30  ;;  %v699_v37 = vsel %vm508_vm4, %v686_v30, %v675_v16  ;;  %v531_v38 = vperm.slane %v523_v34, %v1991_v54 }
 0x258   : > { %v703_v39 = vperm.slane %v699_v37, %v1991_v54  ;;  %v704_v40 = vrot.slane %v687_v36, 4  ;;  %v521_v41 = vsel %vm508_vm4, %v520_v33, %v499_v14  ;;  %v681_v42 = vsel %vm508_vm4, 0.0, %v680_v29 }
 0x259   : > { %v683_v44 = vsel %vm508_vm4, 0.0, %v682_v35  ;;  %v527_v45 = vperm.slane %v521_v41, %v1991_v54  ;;  %v544_v46 = vrot.slane %v531_v38, 4  ;;  %v547_v47 = vsel %vm508_vm4, %v531_v38, %v546_v27 }
 0x25a   : > { %v693_v48 = vrot.slane %v683_v44, 4  ;;  %v705_v49 = vsel %vm508_vm4, %v704_v40, %v685_v32  ;;  %v555_v50 = vperm.slane %v547_v47, %v1996_v2  ;;  %v688_v51 = vsel %vm508_vm4, %v682_v35, %v663_v21 }
 0x25b   : > { %v532_v52 = vrot.slane %v527_v45, 4  ;;  %v535_v53 = vsel %vm508_vm4, %v527_v45, %v534_v31  ;;  %v545_v55 = vsel %vm508_vm4, %v544_v46, %v519_v15  ;;  %v692_v56 = vperm.slane %v688_v51, %v1991_v54 }
 0x25c   : > { %v543_v57 = vperm.slane %v535_v53, %v1996_v2  ;;  %v551_v58 = vperm.slane %v545_v55, %v1996_v2  ;;  %v562_v59 = vrot.slane %v555_v50, 4  ;;  %v694_v60 = vsel %vm508_vm4, %v693_v48, %v681_v42 }
 0x25d   : > { %v533_v61 = vsel %vm508_vm4, %v532_v52, %v515_v17  ;;  %v698_v62 = vperm.slane %v694_v60, %v1991_v54  ;;  %v709_v63 = vperm.slane %v705_v49, %v1991_v54  ;;  %v712_v1 = vrot.slane %v692_v56, 4 }
 0x25e   : > { %v539_v3 = vperm.slane %v533_v61, %v1996_v2  ;;  %v558_v4 = vrot.slane %v543_v57, 4  ;;  %v560_v5 = vrot.slane %v551_v58, 4  ;;  %v563_v6 = vsel %vm508_vm4, 0.0, %v562_v59 }
 0x25f   : > { %v575_v7 = vsel %vm508_vm4, %v562_v59, %v551_v58  ;;  %v580_v8 = vrot.slane %v563_v6, 4  ;;  %v713_v9 = vsel %vm508_vm4, %v698_v62, %v712_v1  ;;  %v724_v10 = vrot.slane %v703_v39, 4 }
 0x260   : > { %v556_v11 = vrot.slane %v539_v3, 4  ;;  %v559_v12 = vsel %vm508_vm4, 0.0, %v558_v4  ;;  %v561_v13 = vsel %vm508_vm4, 0.0, %v560_v5  ;;  %v564_v14 = vsel %vm508_vm4, %v558_v4, %v539_v3 }
 0x261   : > { %v568_v15 = vperm.slane %v564_v14, %v1991_v54  ;;  %v569_v16 = vrot.slane %v559_v12, 4  ;;  %v579_v17 = vperm.slane %v575_v7, %v1991_v54  ;;  %v581_v18 = vsel %vm508_vm4, %v580_v8, %v561_v13 }
 0x262   : > { %v557_v19 = vsel %vm508_vm4, 0.0, %v556_v11  ;;  %v585_v20 = vperm.slane %v581_v18, %v1991_v54  ;;  %v721_v21 = vperm.slane %v713_v9, %v1996_v2  ;;  %v725_v22 = vsel %vm508_vm4, %v709_v63, %v724_v10 }
 0x263   : > { %v600_v23 = vrot.slane %v579_v17, 4  ;;  %v733_v24 = vperm.slane %v725_v22, %v1996_v2  ;;  %v710_v25 = vrot.slane %v698_v62, 4  ;;  %v722_v26 = vrot.slane %v709_v63, 4 }
 0x264   : > { %v740_v27 = vrot.slane %v721_v21, 4  ;;  %v570_v28 = vsel %vm508_vm4, %v569_v16, %v557_v19  ;;  %v588_v29 = vrot.slane %v568_v15, 4  ;;  %v598_v30 = vrot.slane %v585_v20, 4 }
 0x265   : > { %v738_v31 = vrot.slane %v733_v24, 4  ;;  %v711_v32 = vsel %vm508_vm4, %v710_v25, %v692_v56  ;;  %v723_v33 = vsel %vm508_vm4, %v722_v26, %v703_v39  ;;  %v574_v34 = vperm.slane %v570_v28, %v1991_v54 }
 0x266   : > { %v717_v35 = vperm.slane %v711_v32, %v1996_v2  ;;  %v729_v36 = vperm.slane %v723_v33, %v1996_v2  ;;  %v741_v37 = vsel %vm508_vm4, %v733_v24, %v740_v27  ;;  %v601_v38 = vsel %vm508_vm4, %v585_v20, %v600_v23 }
 0x267   : > { %v739_v40 = vsel %vm508_vm4, %v738_v31, %v721_v21  ;;  %v745_v41 = vpack.c.bf16 %v741_v37, %v741_v37  ;;  %v589_v42 = vsel %vm508_vm4, %v574_v34, %v588_v29  ;;  %v609_v44 = vperm.slane %v601_v38, %v1996_v2 }
 0x268   : > { %v744_v45 = vpack.c.bf16 %v739_v40, %v739_v40  ;;  %v734_v46 = vrot.slane %v729_v36, 4  ;;  %v736_v39 = vrot.slane %v717_v35, 4  ;;  %v597_v47 = vperm.slane %v589_v42, %v1996_v2 }
 0x269   : > { %v932_v48 = vsel %vm870_vm5, %v745_v41, 0  ;;  %v614_v49 = vrot.slane %v609_v44, 4  ;;  %v586_v50 = vrot.slane %v574_v34, 4  ;;  %v599_v51 = vsel %vm508_vm4, %v598_v30, %v579_v17 }
 0x26a   : > { %v913_v52 = vsel %vm870_vm5, %v744_v45, 0  ;;  %v735_v53 = vsel %vm508_vm4, %v734_v46, %v717_v35  ;;  %941 = vmatpush.bf16.xpose.msrb.mxu2 %v932_v48  ;;  %v737_v55 = vsel %vm508_vm4, %v729_v36, %v736_v39  ;;  %v605_v56 = vperm.slane %v599_v51, %v1996_v2 }
 0x26b   : > { %922 = vmatpush.bf16.xpose.msrb.mxu1 %v913_v52  ;;  %v742_v57 = vpack.c.bf16 %v735_v53, %v735_v53  ;;  %v743_v58 = vpack.c.bf16 %v737_v55, %v737_v55  ;;  %v587_v59 = vsel %vm508_vm4, %v586_v50, %v568_v15  ;;  %v616_v62 = vrot.slane %v597_v47, 4 }
 0x26c   : > { %v593_v60 = vperm.slane %v587_v59, %v1996_v2  ;;  %v610_v61 = vrot.slane %v605_v56, 4  ;;  %v615_v3 = vsel %vm508_vm4, %v614_v49, %v597_v47  ;;  %v758_v51 = vrot.slane %v1985_v43, 4 }
 0x26d   : > { %v875_v63 = vsel %vm870_vm5, %v742_v57, 0  ;;  %v894_v1 = vsel %vm870_vm5, %v743_v58, 0  ;;  %v617_v5 = vsel %vm508_vm4, %v609_v44, %v616_v62  ;;  %v620_v7 = vpack.c.bf16 %v615_v3, %v615_v3 }
 0x26e   : > { %884 = vmatpush.bf16.xpose.msra.mxu3 %v875_v63  ;;  %903 = vmatpush.bf16.xpose.msrb.mxu0 %v894_v1  ;;  %v612_v4 = vrot.slane %v593_v60, 4  ;;  %v621_v6 = vpack.c.bf16 %v617_v5, %v617_v5  ;;  %v611_v8 = vsel %vm508_vm4, %v610_v61, %v593_v60 }
 0x26f   : > { %v618_v10 = vpack.c.bf16 %v611_v8, %v611_v8 }
 0x270   : > { %v613_v9 = vsel %vm508_vm4, %v605_v56, %v612_v4 }
 0x271   : > { %1404 = vmatmul.msk.bf16.vlgmr.msrb.gmra.mxu2 %vm870_vm5, %v621_v6  ;;  %v619_v11 = vpack.c.bf16 %v613_v9, %v613_v9 }
 0x272   : > { %1403 = vmatmul.msk.bf16.vlgmr.msrb.gmra.mxu1 %vm870_vm5, %v620_v7 }
 0x275   : > { %1401 = vmatmul.msk.bf16.vlgmr.msra.gmra.mxu3 %vm870_vm5, %v618_v10  ;;  %1402 = vmatmul.msk.bf16.vlgmr.msrb.gmra.mxu0 %vm870_vm5, %v619_v11 }
 0x2ef   : > { %v924_v12 = vpop.f32.mrf.mxu1 }
 0x2f0   : > { %v953_v13 = vsel %vm870_vm5, %v924_v12, -inf }
 0x2f1   : > { %954 = vmax.xlane.f32.xlu0 %v953_v13 }
 0x2f2   : > { %v905_v14 = vpop.f32.mrf.mxu0 }
 0x2f3   : > { %v950_v15 = vsel %vm870_vm5, %v905_v14, -inf }
 0x2f4   : > { %951 = vmax.xlane.f32.xlu2 %v950_v15  ;;  %v943_v16 = vpop.f32.mrf.mxu2 }
 0x2f5   : > { %v956_v17 = vsel %vm870_vm5, %v943_v16, -inf }
 0x2f6   : > { %957 = vmax.xlane.f32.xlu1 %v956_v17 }
 0x2f7   : > { %v926_v18 = vpop.f32.mrf.mxu1 }
 0x2f8   : > { %v886_v19 = vpop.f32.mrf.mxu3 }
 0x2f9   : > { %v947_v21 = vsel %vm870_vm5, %v886_v19, -inf }
 0x2fa   : > { %v907_v20 = vpop.f32.mrf.mxu0 }
 0x2fc   : > { %948 = vmax.xlane.f32.xlu2 %v947_v21  ;;  %v945_v22 = vpop.f32.mrf.mxu2 }
 0x300   : > { %v888_v23 = vpop.f32.mrf.mxu3 }
 0x305   : > { %753 = vrot.lane.b32.xlu0 %v1985_v43, %s1783_s1  ;;  %s1714_s1 = sshra.s32 %s1250_s11, 4  ;;  %s1715_s1 = int_to_ptr.hbm [resolvable:$true] %s1714_s1 }
 0x306   : > { %p1721_p12 = scmp.lt.s32.totalorder %s1715_s1, %s2248_s7 }
 0x30f   : > { %750 = vrot.lane.b32.xlu1 %v1985_v43, %s1785_s12 }
 0x314   : > { %747 = vrot.lane.b32.xlu2 %v1985_v43, %s1784_s9  ;;  %s1716_s9 = scalar_lea.hbm %s1715_s1, 8 }
 0x315   : > { %p1717_p1 = scmp.ne.s32.totalorder %s1715_s1, %s1716_s9  ;;  %p1722_p7 = scmp.lt.s32.totalorder %s1720_s27, %s1716_s9 }
 0x317   : > { %p1718_p3 = pnand %p1717_p1, %p1924_p4  ;;  %p1723_p8 = por %p1722_p7, %p1721_p12 }
 0x319   : > { %p1719_p5 = pneg %p1718_p3 }
 0x31b   : > { %p1724_p9 = pnand %p1723_p8, %p1719_p5 }
 0x364   : > { %v955_v24 = vpop.xlane.xlu0 %954 }
 0x365   : > { %v961_v25 = vsub.f32 %v924_v12, %v955_v24 }
 0x367   : > { %v967_v26 = vmul.f32 1.442695, %v961_v25  ;;  %v952_v27 = vpop.xlane.xlu2 %951 }
 0x368   : > { %v960_v35 = vsub.f32 %v905_v14, %v952_v27 }
 0x369   : > { %1534 = vpow2.f32 %v967_v26  ;;  %v958_v28 = vpop.xlane.xlu1 %957 }
 0x36a   : > { %v962_v29 = vsub.f32 %v943_v16, %v958_v28  ;;  %v965_v40 = vmul.f32 1.442695, %v960_v35 }
 0x36c   : > { %v969_v30 = vmul.f32 1.442695, %v962_v29 }
 0x36e   : > { %1536 = vpow2.f32 %v969_v30 }
 0x36f   : > { %v2092_v31 = vpop.eup %1534  ;;  %v949_v32 = vpop.xlane.xlu2 %948 }
 0x370   : > { %v959_v33 = vsub.f32 %v886_v19, %v949_v32  ;;  %v977_v34 = vsel %vm870_vm5, %v2092_v31, 0.0 }
 0x371   : > { %978 = vadd.xlane.f32.xlu0 %v977_v34 }
 0x372   : > { %v963_v36 = vmul.f32 1.442695, %v959_v33 }
 0x374   : > { %v2096_v37 = vpop.eup %1536  ;;  %1538 = vpow2.f32 %v963_v36 }
 0x375   : > { %v980_v38 = vsel %vm870_vm5, %v2096_v37, 0.0  ;;  %1540 = vpow2.f32 %v965_v40 }
 0x376   : > { %981 = vadd.xlane.f32.xlu1 %v980_v38 }
 0x377   : > { %v754_v41 = vpop.permute.xlu0 %753  ;;  %v748_v42 = vpop.permute.xlu2 %747 }
 0x378   : > { %v770_v44 = vrot.slane %v748_v42, 4  ;;  %v768_v46 = vrot.slane %v754_v41, 4 }
 0x37a   : > { %v2100_v45 = vpop.eup %1538  ;;  %v771_v47 = vsel %vm508_vm4, %v754_v41, %v770_v44  ;;  %v769_v48 = vsel %vm508_vm4, %v768_v46, %v748_v42 }
 0x37b   : > { %v971_v39 = vsel %vm870_vm5, %v2100_v45, 0.0  ;;  %v779_v49 = vperm.slane %v771_v47, %v1991_v54  ;;  %v2107_v50 = vpop.eup %1540  ;;  %v775_v52 = vperm.slane %v769_v48, %v1991_v54 }
 0x37c   : > { %972 = vadd.xlane.f32.xlu2 %v971_v39  ;;  %v974_v59 = vsel %vm870_vm5, %v2107_v50, 0.0 }
 0x37d   : > { %v792_v57 = vrot.slane %v779_v49, 4  ;;  %v780_v61 = vrot.slane %v775_v52, 4 }
 0x381   : > { %v751_v53 = vpop.permute.xlu1 %750 }
 0x382   : > { %v756_v55 = vrot.slane %v751_v53, 4  ;;  %v759_v56 = vsel %vm508_vm4, %v751_v53, %v758_v51 }
 0x383   : > { %v767_v58 = vperm.slane %v759_v56, %v1991_v54 }
 0x384   : > { %v757_v60 = vsel %vm508_vm4, %v756_v55, %v1985_v43  ;;  %975 = vadd.xlane.f32.xlu2 %v974_v59 }
 0x385   : > { %v763_v62 = vperm.slane %v757_v60, %v1991_v54  ;;  %v793_v63 = vsel %vm508_vm4, %v792_v57, %v767_v58  ;;  %v794_v1 = vrot.slane %v767_v58, 4 }
 0x386   : > { %v799_v3 = vperm.slane %v793_v63, %v1996_v2 }
 0x387   : > { %v781_v4 = vsel %vm508_vm4, %v780_v61, %v763_v62  ;;  %v782_v5 = vrot.slane %v763_v62, 4  ;;  %v795_v6 = vsel %vm508_vm4, %v779_v49, %v794_v1 }
 0x388   : > { %v787_v7 = vperm.slane %v781_v4, %v1996_v2  ;;  %v803_v8 = vperm.slane %v795_v6, %v1996_v2  ;;  %v808_v10 = vrot.slane %v799_v3, 4 }
 0x389   : > { %v783_v43 = vsel %vm508_vm4, %v775_v52, %v782_v5 }
 0x38a   : > { %v791_v9 = vperm.slane %v783_v43, %v1996_v2  ;;  %v810_v11 = vrot.slane %v803_v8, 4  ;;  %v804_v12 = vrot.slane %v787_v7, 4  ;;  %v809_v19 = vsel %vm508_vm4, 0.0, %v808_v10 }
 0x38c   : > { %v806_v13 = vrot.slane %v791_v9, 4  ;;  %v811_v14 = vsel %vm508_vm4, 0.0, %v810_v11  ;;  %v823_v15 = vsel %vm508_vm4, %v810_v11, %v799_v3  ;;  %v805_v25 = vsel %vm508_vm4, 0.0, %v804_v12 }
 0x38d   : > { %v827_v16 = vperm.slane %v823_v15, %v1991_v54  ;;  %v828_v17 = vrot.slane %v811_v14, 4 }
 0x38e   : > { %v807_v18 = vsel %vm508_vm4, 0.0, %v806_v13  ;;  %v812_v20 = vsel %vm508_vm4, %v806_v13, %v787_v7 }
 0x38f   : > { %v817_v21 = vrot.slane %v807_v18, 4  ;;  %v829_v22 = vsel %vm508_vm4, %v828_v17, %v809_v19  ;;  %v848_v23 = vrot.slane %v827_v16, 4  ;;  %v816_v24 = vperm.slane %v812_v20, %v1991_v54 }
 0x390   : > { %v833_v26 = vperm.slane %v829_v22, %v1991_v54 }
 0x391   : > { %v818_v27 = vsel %vm508_vm4, %v817_v21, %v805_v25  ;;  %v836_v28 = vrot.slane %v816_v24, 4 }
 0x392   : > { %v822_v29 = vperm.slane %v818_v27, %v1991_v54  ;;  %v849_v30 = vsel %vm508_vm4, %v833_v26, %v848_v23  ;;  %v846_v32 = vrot.slane %v833_v26, 4 }
 0x393   : > { %v857_v33 = vperm.slane %v849_v30, %v1996_v2 }
 0x394   : > { %v837_v34 = vsel %vm508_vm4, %v822_v29, %v836_v28  ;;  %v834_v35 = vrot.slane %v822_v29, 4  ;;  %v847_v36 = vsel %vm508_vm4, %v846_v32, %v827_v16 }
 0x395   : > { %v845_v38 = vperm.slane %v837_v34, %v1996_v2  ;;  %v862_v40 = vrot.slane %v857_v33, 4  ;;  %v853_v41 = vperm.slane %v847_v36, %v1996_v2 }
 0x396   : > { %v835_v42 = vsel %vm508_vm4, %v834_v35, %v816_v24 }
 0x397   : > { %v863_v44 = vsel %vm508_vm4, %v862_v40, %v845_v38  ;;  %v841_v46 = vperm.slane %v835_v42, %v1996_v2  ;;  %v858_v39 = vrot.slane %v853_v41, 4  ;;  %v864_v47 = vrot.slane %v845_v38, 4 }
 0x398   : > { %v868_v48 = vpack.c.bf16 %v863_v44, %v863_v44 }
 0x399   : > { %v859_v49 = vsel %vm508_vm4, %v858_v39, %v841_v46  ;;  %v860_v51 = vrot.slane %v841_v46, 4  ;;  %v865_v52 = vsel %vm508_vm4, %v857_v33, %v864_v47 }
 0x39a   : > { %v1038_v53 = vsel %vm998_vm6, %v868_v48, 0  ;;  %v866_v55 = vpack.c.bf16 %v859_v49, %v859_v49  ;;  %v869_v56 = vpack.c.bf16 %v865_v52, %v865_v52 }
 0x39b   : > { %1047 = vmatpush.bf16.msra.mxu1 %v1038_v53  ;;  %v861_v57 = vsel %vm508_vm4, %v853_v41, %v860_v51 }
 0x39c   : > { %v1000_v58 = vsel %vm998_vm6, %v866_v55, 0  ;;  %v1057_v59 = vsel %vm998_vm6, %v869_v56, 0  ;;  %v867_v60 = vpack.c.bf16 %v861_v57, %v861_v57 }
 0x39d   : > { %1009 = vmatpush.bf16.msrb.mxu3 %v1000_v58  ;;  %1066 = vmatpush.bf16.msra.mxu2 %v1057_v59 }
 0x39e   : > { %v1019_v61 = vsel %vm998_vm6, %v867_v60, 0 }
 0x39f   : > { %1028 = vmatpush.bf16.msra.mxu0 %v1019_v61 }
 0x3e4   : > { %v979_v62 = vpop.xlane.xlu0 %978 }
 0x3e5   : > { %1542 = vrcp.f32 %v979_v62 }
 0x3e9   : > { %v982_v63 = vpop.xlane.xlu1 %981 }
 0x3ea   : > { %1544 = vrcp.f32 %v982_v63 }
 0x3eb   : > { %v1543_v1 = vpop.eup %1542 }
 0x3ec   : > { %v989_v3 = vmul.f32 %v1543_v1, %v2092_v31 }
 0x3ee   : > { %v993_v4 = vpack.c.bf16 %v989_v3, %v989_v3 }
 0x3ef   : > { %v973_v5 = vpop.xlane.xlu2 %972 }
 0x3f0   : > { %v1545_v6 = vpop.eup %1544  ;;  %1407 = vmatmul.msk.bf16.vlgmr.msra.gmra.mxu1 %vm870_vm5, %v993_v4  ;;  %1546 = vrcp.f32 %v973_v5 }
 0x3f1   : > { %v990_v7 = vmul.f32 %v1545_v6, %v2096_v37 }
 0x3f3   : > { %v994_v8 = vpack.c.bf16 %v990_v7, %v990_v7 }
 0x3f5   : > { %1408 = vmatmul.msk.bf16.vlgmr.msra.gmra.mxu2 %vm870_vm5, %v994_v8 }
 0x3f6   : > { %v1547_v43 = vpop.eup %1546 }
 0x3f7   : > { %v987_v9 = vmul.f32 %v1547_v43, %v2100_v45  ;;  %v976_v10 = vpop.xlane.xlu2 %975 }
 0x3f8   : > { %1548 = vrcp.f32 %v976_v10 }
 0x3f9   : > { %v991_v11 = vpack.c.bf16 %v987_v9, %v987_v9 }
 0x3fb   : > { %1405 = vmatmul.msk.bf16.vlgmr.msrb.gmra.mxu3 %vm870_vm5, %v991_v11 }
 0x3fe   : > { %v1549_v31 = vpop.eup %1548 }
 0x3ff   : > { %v988_v12 = vmul.f32 %v1549_v31, %v2107_v50 }
 0x401   : > { %v992_v13 = vpack.c.bf16 %v988_v12, %v988_v12 }
 0x403   : > { %1406 = vmatmul.msk.bf16.vlgmr.msra.gmra.mxu0 %vm870_vm5, %v992_v13 }
 0x46d   : > { %v1049_v14 = vpop.f32.mrf.mxu1 }
 0x46e   : > { %v1072_v16 = vrot.slane %v1049_v14, 4 }
 0x475   : > { %v1051_v15 = vpop.f32.mrf.mxu1 }
 0x478   : > { %v1068_v37 = vpop.f32.mrf.mxu2 }
 0x479   : > { %v1084_v18 = vrot.slane %v1068_v37, 4 }
 0x47e   : > { %v1011_v17 = vpop.f32.mrf.mxu3 }
 0x47f   : > { %v1073_v19 = vsel %vm508_vm4, %v1072_v16, %v1011_v17  ;;  %v1074_v45 = vrot.slane %v1011_v17, 4 }
 0x480   : > { %v1079_v20 = vperm.slane %v1073_v19, %v1991_v54  ;;  %v1030_v21 = vpop.f32.mrf.mxu0  ;;  %v1070_v22 = vpop.f32.mrf.mxu2 }
 0x481   : > { %v1075_v23 = vsel %vm508_vm4, %v1049_v14, %v1074_v45  ;;  %v1085_v50 = vsel %vm508_vm4, %v1084_v18, %v1030_v21  ;;  %v1086_v24 = vrot.slane %v1030_v21, 4  ;;  %v1428_v21 = vld [vmem:[#allocation12] sm:$0xff] }
 0x482   : > { %v1083_v25 = vperm.slane %v1075_v23, %v1991_v54  ;;  %v1098_v26 = vrot.slane %v1079_v20, 4  ;;  %v1091_v27 = vperm.slane %v1085_v50, %v1991_v54 }
 0x483   : > { %v1087_v28 = vsel %vm508_vm4, %v1068_v37, %v1086_v24 }
 0x484   : > { %v1110_v29 = vrot.slane %v1083_v25, 4  ;;  %v1095_v30 = vperm.slane %v1087_v28, %v1991_v54  ;;  %v1096_v32 = vrot.slane %v1091_v27, 4  ;;  %v1099_v33 = vsel %vm508_vm4, %v1091_v27, %v1098_v26 }
 0x485   : > { %v1107_v34 = vperm.slane %v1099_v33, %v1996_v2 }
 0x486   : > { %v1097_v35 = vsel %vm508_vm4, %v1096_v32, %v1079_v20  ;;  %v1108_v36 = vrot.slane %v1095_v30, 4  ;;  %v1111_v38 = vsel %vm508_vm4, %v1095_v30, %v1110_v29  ;;  %v1013_v40 = vpop.f32.mrf.mxu3  ;;  %v1429_v20 = vld [vmem:[#allocation12 + $0x8] sm:$0xff] }
 0x487   : > { %v1103_v41 = vperm.slane %v1097_v35, %v1996_v2  ;;  %v1119_v42 = vperm.slane %v1111_v38, %v1996_v2  ;;  %v1122_v44 = vrot.slane %v1107_v34, 4  ;;  %1225 = vmatpush.bf16.msra.mxu3 %v1429_v20 }
 0x488   : > { %v1109_v46 = vsel %vm508_vm4, %v1108_v36, %v1083_v25  ;;  %v1032_v39 = vpop.f32.mrf.mxu0 }
 0x489   : > { %v1115_v47 = vperm.slane %v1109_v46, %v1996_v2  ;;  %v1120_v48 = vrot.slane %v1103_v41, 4  ;;  %v1123_v49 = vsel %vm508_vm4, 0.0, %v1122_v44  ;;  %v1126_v51 = vrot.slane %v1119_v42, 4 }
 0x48a   : > { %v1128_v52 = vsel %vm508_vm4, %v1122_v44, %v1103_v41  ;;  %v1133_v53 = vrot.slane %v1123_v49, 4 }
 0x48b   : > { %v1121_v55 = vsel %vm508_vm4, 0.0, %v1120_v48  ;;  %v1124_v56 = vrot.slane %v1115_v47, 4  ;;  %v1127_v57 = vsel %vm508_vm4, 0.0, %v1126_v51  ;;  %v1132_v58 = vperm.slane %v1128_v52, %v1991_v54  ;;  %1226 = vmatpush.bf16.msra.mxu3 %v1428_v21 }
 0x48c   : > { %v1144_v59 = vrot.slane %v1127_v57, 4  ;;  %v1134_v60 = vsel %vm508_vm4, %v1133_v53, %v1121_v55  ;;  %v1139_v61 = vsel %vm508_vm4, %v1126_v51, %v1115_v47 }
 0x48d   : > { %v1125_v62 = vsel %vm508_vm4, 0.0, %v1124_v56  ;;  %v1138_v63 = vperm.slane %v1134_v60, %v1991_v54  ;;  %v1143_v1 = vperm.slane %v1139_v61, %v1991_v54  ;;  %v1152_v3 = vrot.slane %v1132_v58, 4 }
 0x48e   : > { %v1145_v4 = vsel %vm508_vm4, %v1144_v59, %v1125_v62 }
 0x48f   : > { %v1149_v5 = vperm.slane %v1145_v4, %v1991_v54  ;;  %v1153_v6 = vsel %vm508_vm4, %v1138_v63, %v1152_v3  ;;  %v1164_v7 = vrot.slane %v1143_v1, 4  ;;  %v1150_v8 = vrot.slane %v1138_v63, 4 }
 0x490   : > { %v1161_v43 = vperm.slane %v1153_v6, %v1996_v2 }
 0x491   : > { %v1165_v9 = vsel %vm508_vm4, %v1149_v5, %v1164_v7  ;;  %v1151_v10 = vsel %vm508_vm4, %v1150_v8, %v1132_v58  ;;  %v1162_v11 = vrot.slane %v1149_v5, 4 }
 0x492   : > { %v1173_v31 = vperm.slane %v1165_v9, %v1996_v2  ;;  %v1180_v12 = vrot.slane %v1161_v43, 4  ;;  %v1157_v13 = vperm.slane %v1151_v10, %v1996_v2 }
 0x493   : > { %v1163_v14 = vsel %vm508_vm4, %v1162_v11, %v1143_v1 }
 0x494   : > { %v1181_v54 = vsel %vm508_vm4, %v1173_v31, %v1180_v12  ;;  %v1178_v15 = vrot.slane %v1173_v31, 4  ;;  %v1169_v37 = vperm.slane %v1163_v14, %v1996_v2  ;;  %v1176_v16 = vrot.slane %v1157_v13, 4 }
 0x495   : > { %1191 = vrot.lane.b32.xlu0 %v1181_v54, %s1788_s13 }
 0x496   : > { %v1179_v17 = vsel %vm508_vm4, %v1178_v15, %v1161_v43  ;;  %v1174_v18 = vrot.slane %v1169_v37, 4  ;;  %v1177_v19 = vsel %vm508_vm4, %v1169_v37, %v1176_v16 }
 0x497   : > { %1187 = vrot.lane.b32.xlu2 %v1179_v17, %s1789_s16  ;;  %1183 = vrot.lane.b32.xlu1 %v1177_v19, %s1790_s23 }
 0x498   : > { %v1175_v45 = vsel %vm508_vm4, %v1174_v18, %v1157_v13 }
 0x4f1   : > { %v1188_v22 = vpop.permute.xlu2 %1187 }
 0x507   : > { %v1192_v50 = vpop.permute.xlu0 %1191 }
 0x509   : > { %v1184_v2 = vpop.permute.xlu1 %1183 }
 0x50a   : > { %v1194_v23 = vsel %vm870_vm5, %v1175_v45, %v1184_v2 }
 0x50b   : > { %v1196_v24 = vsel %vm1195_vm7, %v1194_v23, %v1188_v22 }
 0x50c   : > { %v1198_v25 = vsel %vm1197_vm8, %v1196_v24, %v1192_v50 }
 0x50d   : > { %v1199_v26 = vpack.c.bf16 %v1198_v25, %v1198_v25 }
 0x50f   : > { %1417 = vmatmul.msk.bf16.vlgmr.msra.gmra.mxu3 %vm368_vm0, %v1199_v26 }
 0x592   : > { %v1228_v27 = vpop.f32.mrf.mxu3 }
 0x593   : > { %v1232_v28 = vadd.f32 %v1228_v27, %v1973_v0 }
 0x595   : > { %1233 = vst.msk [vmem:[%s363_s0] sm:$0xff] %vm368_vm0, %v1232_v28 }
 0x596   : > { %1727 = shalt.err (!%p1724_p9)
}
 0x597   : > { %1448 = dma.vmem_to_hbm [thread:$0]  (%p1924_p4), %s1248_s15, 128, %s1250_s11, %s1235_s17  }
 0x59a   : > { %v1230_v0 = vpop.f32.mrf.mxu3 }
 0x59b PF: > { %s1261_s20 = sand.u32 1, %s1762_s28   ;;  %p2256_p10 = scmp.ge.s32.totalorder %s1774_s8, 2 }
 0x59c   : > { %s1262_s23 = scalar_lea.sflag [#allocation6], %s1261_s20 }
 0x59d   : > { %p1468_p13 = pnand %p2256_p10, %p1928_p6 }
 0x59f   : > { %p1469_p11 = pneg %p1468_p13 }
 0x5a1   : > { %1757 = dma.done.wait (%p1469_p11), %s1262_s23, 128  }
 0x5a2   : > { %1759 = vsyncadd (%p1469_p11), %s1262_s23, 4294967168  ;;  %p24_p0 = scmp.ge.s32.totalorder %s1898_s14, 4   ;;  %s2257_s28 = smov %s1766_s29 }
 0x5a3   : > { %s2258_s29 = smov %s1770_s30  ;;  %s2259_s30 = smov %s1909_s18 }
 0x5a4   : > { %s2260_s8 = smov %s1898_s14  ;;  %26 = sbr.rel (!%p24_p0) target bundleno = 10 (0xa), region = 109 }
 0x5a9   :  { %1268 = vsyncpa [#allocation5], 1 }
 0x5aa   :  { %1270 = vsyncpa [#allocation5 + $0x1], 1 }
 0x5ab   :  { %1271 = vsyncpa [#allocation8], 1 }
 0x5ac   :  { %1272 = vsyncpa [#allocation11], 1 }
 0x5ad   :  { %1273 = vsyncpa [#allocation6], 1 }
 0x5ae   :  { %1275 = vsyncpa [#allocation6 + $0x1], 1 }

</bundles_post_ra>
